<compile_context>
chip_gen: v7x
topology: tpu7x:2x2x1
jax: 0.10.0
libtpu: 0.0.40
codegen_flags: <defaults>
</compile_context>

<pallas_src>
import numpy as np

import jax
import jax.numpy as jnp
from jax.experimental import pallas as pl
from jax.experimental.pallas import tpu as pltpu

LANE = 128  # channel padding multiple -> lane-dense compute & unmasked stores


def _round_up(n, m=LANE):
    return ((n + m - 1) // m) * m


def _vmem_capacity_bytes():
    """Per-core VMEM capacity (generation aware), conservative fallback."""
    try:
        return int(pltpu.get_tpu_info().vmem_capacity_bytes)
    except Exception:
        return 64 * 1024 * 1024  # v7x per-TensorCore size (safe everywhere)


# ----------------------------------------------------------------------------
# Elementwise math (identical inside the Pallas kernels and in the reference).
# ----------------------------------------------------------------------------
def _erf_f32(x):
    # Abramowitz & Stegun 7.1.26 polynomial, |err| ~ 1.5e-7 (f32); exp/mul/add
    # only, so it lowers cleanly in Mosaic.
    a1, a2, a3, a4, a5 = (0.254829592, -0.284496736, 1.421413741,
                          -1.453152027, 1.061405429)
    p = 0.3275911
    ax = jnp.abs(x)
    t = 1.0 / (1.0 + p * ax)
    poly = ((((a5 * t + a4) * t + a3) * t + a2) * t + a1) * t
    y = 1.0 - poly * jnp.exp(-ax * ax)
    return jnp.where(x >= 0.0, y, -y)


def _gelu(x):
    # PyTorch nn.GELU() (erf formulation).
    return 0.5 * x * (1.0 + _erf_f32(x * 0.7071067811865476))


def _softplus(x):
    # PyTorch nn.Softplus(beta=1, threshold=20).
    return jnp.where(x > 20.0, x, jnp.log(1.0 + jnp.exp(jnp.minimum(x, 20.0))))


# ----------------------------------------------------------------------------
# Fused block kernel: GELU -> dilated conv (K bf16 MXU matmuls) -> folded BN
# scale/bias -> [GELU -> 1x1 conv -> scale/bias] -> [+residual] -> [softplus]
# -> [maxpool] -> store.  Activation input lives in HBM; each grid step DMAs a
# TL-row window (plus tiny halo buffers) with double buffering and cross-step
# prefetch that never leaves its p-chunk of the grid.
# ----------------------------------------------------------------------------
def _make_block_kernel(*, K, dilation, lp, rp, TL, L, NT, NTp, pool, Cin,
                       two_stage, residual, softplus, use_lbuf, use_rbuf):
    def kernel(*refs):
        i = 0
        x_hbm = refs[i]; i += 1            # (B, L, Cin)   HBM (pl.ANY)
        w1_ref = refs[i]; i += 1           # (K, Cin, C1)  bf16, resident VMEM
        s1_ref = refs[i]; i += 1           # (1, C1)  folded BN scale
        b1_ref = refs[i]; i += 1           # (1, C1)  folded conv-bias + BN bias
        w2_ref = s2_ref = b2_ref = None
        if two_stage:
            w2_ref = refs[i]; i += 1       # (C1, C2)  bf16 (1x1 conv)
            s2_ref = refs[i]; i += 1       # (1, C2)
            b2_ref = refs[i]; i += 1       # (1, C2)
        o_ref = refs[i]; i += 1            # (1, TL//pool, Cout)
        xbuf = refs[i]; i += 1             # VMEM (2, TL, Cin)  center, dbl-buf
        sem = refs[i]; i += 1              # DMA sems (2, n_copies)
        lbuf = rbuf = None
        if use_lbuf:
            lbuf = refs[i]; i += 1         # VMEM (2, lp, Cin) left halo
        if use_rbuf:
            rbuf = refs[i]; i += 1         # VMEM (2, rp, Cin) right halo
        hbuf = None
        if K > 1:
            hbuf = refs[i]; i += 1         # VMEM (TL + halo, Cin) f32 window
        pool_ref = None
        if pool > 1:
            pool_ref = refs[i]; i += 1     # VMEM (TL, Cout) f32 pool stage

        p = pl.program_id(0)               # L-split (parallel) axis
        b = pl.program_id(1)               # batch
        t = pl.program_id(2)               # tile within p-chunk
        num_b = pl.num_programs(1)
        tg = p * NTp + t                   # global L-tile index in [0, NT)
        step = b * NTp + t                 # step within this core's p-chunk
        slot = step % 2

        def copies(bb, tgg, slot_):
            """Identical DMA descriptors for start() and wait().  All VMEM
            destinations start at offset 0 (aligned); boundary sources are
            clamped in-range and the halo rows are zero-overridden later."""
            start_c = pl.multiple_of(tgg * TL, TL)
            cps = [pltpu.make_async_copy(x_hbm.at[bb, pl.ds(start_c, TL)],
                                         xbuf.at[slot_], sem.at[slot_, 0])]
            j = 1
            if use_lbuf:
                start_l = jnp.maximum(tgg * TL - lp, 0)
                cps.append(pltpu.make_async_copy(
                    x_hbm.at[bb, pl.ds(start_l, lp)],
                    lbuf.at[slot_], sem.at[slot_, j]))
                j += 1
            if use_rbuf:
                start_r = jnp.minimum(tgg * TL + TL, L - rp)
                cps.append(pltpu.make_async_copy(
                    x_hbm.at[bb, pl.ds(start_r, rp)],
                    rbuf.at[slot_], sem.at[slot_, j]))
                j += 1
            return cps

        def start_fetch(bb, tgg, slot_):
            for c in copies(bb, tgg, slot_):
                c.start()

        # Prime this p-chunk's pipeline at its first step (correct under any
        # megacore partitioning of the leading 'parallel' axis).
        @pl.when(step == 0)
        def _():
            start_fetch(b, tg, slot)

        # Prefetch the next step's window (crosses batch boundaries, but never
        # leaves this p-chunk), overlapping its DMA with this tile's compute.
        @pl.when(step + 1 < num_b * NTp)
        def _():
            nxt_t = jnp.where(t + 1 < NTp, t + 1, 0)
            nxt_b = jnp.where(t + 1 < NTp, b, b + 1)
            start_fetch(nxt_b, p * NTp + nxt_t, 1 - slot)

        # Wait for this tile's window (identical descriptors as the start).
        for c in copies(b, tg, slot):
            c.wait()

        # ---------------- compute ----------------
        xc = xbuf[slot].astype(jnp.float32)        # (TL, Cin) raw block input
        C1 = w1_ref.shape[-1]

        if K > 1:
            # Assemble the GELU'd halo window once in VMEM; per-tap windows are
            # then re-read from the ref (no materialized unaligned value copies).
            hbuf[pl.ds(lp, TL), :] = _gelu(xc)
            if lp > 0:
                if use_lbuf:
                    lv = _gelu(lbuf[slot].astype(jnp.float32))
                    lv = jnp.where(tg == 0, jnp.zeros_like(lv), lv)
                else:
                    lv = jnp.zeros((lp, Cin), jnp.float32)
                hbuf[pl.ds(0, lp), :] = lv
            if rp > 0:
                if use_rbuf:
                    rv = _gelu(rbuf[slot].astype(jnp.float32))
                    rv = jnp.where(tg == NT - 1, jnp.zeros_like(rv), rv)
                else:
                    rv = jnp.zeros((rp, Cin), jnp.float32)
                hbuf[pl.ds(lp + TL, rp), :] = rv

            acc = None
            for k in range(K):                     # K static & small -> unrolled
                hk = hbuf[pl.ds(k * dilation, TL), :].astype(jnp.bfloat16)
                part = jnp.dot(hk, w1_ref[k], preferred_element_type=jnp.float32)
                acc = part if acc is None else acc + part
        else:
            hb = _gelu(xc).astype(jnp.bfloat16)
            acc = jnp.dot(hb, w1_ref[0], preferred_element_type=jnp.float32)

        y = acc * s1_ref[...] + b1_ref[...]        # folded conv bias + eval BN

        if two_stage:
            # Fused dilated_residual tail: GELU -> 1x1 conv -> scale/bias, with
            # the (TL, C1) intermediate kept entirely in VMEM/vregs.
            h2 = _gelu(y).astype(jnp.bfloat16)
            y = jnp.dot(h2, w2_ref[...], preferred_element_type=jnp.float32)
            y = y * s2_ref[...] + b2_ref[...]

        if residual:
            y = y + xc                             # raw block input (center rows)

        if softplus:
            y = _softplus(y)

        if pool > 1:
            # MaxPool1d(pool): tile-sized VMEM stage + strided pl.ds reads.
            Lo_t = TL // pool
            pool_ref[...] = y
            m = pool_ref[pl.ds(0, Lo_t, stride=pool), :]
            for j in range(1, pool):
                m = jnp.maximum(m, pool_ref[pl.ds(j, Lo_t, stride=pool), :])
            o_ref[0] = m.astype(o_ref.dtype)
        else:
            o_ref[0] = y.astype(o_ref.dtype)

    return kernel


def _pick_tile(L, pool, halo, Cin, C1, Cout, K, in_it, out_it, w_bytes,
               budget, max_tile_len):
    """Largest L-tile that fits the VMEM budget; prefers an even tile count so
    the leading grid axis can be split across TensorCores."""
    rp_max = (halo + 1) // 2

    def est(TL):
        e = 2 * TL * Cin * in_it               # double-buffered center window
        e += 2 * halo * Cin * in_it            # halo buffers
        if K > 1:
            e += (TL + halo) * Cin * 4         # f32 GELU window
        e += w_bytes                           # resident weights / scales
        e += 2 * (TL // pool) * Cout * out_it  # double-buffered output block
        if pool > 1:
            e += TL * Cout * out_it            # pool stage
        e += 4 * TL * max(C1, Cout) * 4        # live f32 working values
        return e

    valid = [TL for TL in range(L, 0, -1)
             if L % TL == 0 and TL % pool == 0
             and (TL == L or (TL % (8 * pool) == 0 and TL >= rp_max))]
    capped = [TL for TL in valid if max_tile_len is None or TL <= max_tile_len]
    if not capped:
        capped = valid
    fit = [TL for TL in capped if est(TL) <= budget]
    pick_from = fit if fit else [min(capped)]
    even = [TL for TL in pick_from if (L // TL) % 2 == 0]
    TL = max(even) if even else max(pick_from)
    return TL, L // TL


def fused_block(x, lyr, max_tile_len=None):
    """x: (B, L, Cin) activation (bf16, lane-padded channels)."""
    B, L, Cin = x.shape
    K, d, pool = lyr['K'], lyr['dilation'], lyr['pool']
    two = lyr['w2'] is not None
    halo = d * (K - 1)                 # 'same' padding total (stride 1)
    lp = halo // 2
    rp = halo - lp

    w1 = lyr['w1']
    C1 = w1.shape[-1]
    Cout = lyr['w2'].shape[-1] if two else C1
    out_dtype = jnp.dtype(lyr['out_dtype'])
    in_it = x.dtype.itemsize
    out_it = out_dtype.itemsize
    w_bytes = (w1.size * w1.dtype.itemsize
               + (lyr['w2'].size * lyr['w2'].dtype.itemsize if two else 0)
               + 4 * max(C1, Cout) * 4)

    # Generation-aware VMEM budget / limit (v7x: 64 MiB/core, v5e/v6e: 128 MiB).
    cap = _vmem_capacity_bytes()
    vmem_limit = max(32 * 1024 * 1024, min(int(cap * 0.625), 100 * 1024 * 1024))
    budget = int(vmem_limit * 0.8)

    TL, NT = _pick_tile(L, pool, halo, Cin, C1, Cout, K, in_it, out_it,
                        w_bytes, budget, max_tile_len)
    P = 2 if NT % 2 == 0 else 1        # leading parallel L-split (megacore)
    NTp = NT // P
    Lo = L // pool
    TLH = TL + halo

    use_lbuf = (NT > 1 and lp > 0)
    use_rbuf = (NT > 1 and rp > 0)
    n_copies = 1 + int(use_lbuf) + int(use_rbuf)

    kernel = _make_block_kernel(
        K=K, dilation=d, lp=lp, rp=rp, TL=TL, L=L, NT=NT, NTp=NTp, pool=pool,
        Cin=Cin, two_stage=two, residual=lyr['residual'],
        softplus=lyr['softplus'], use_lbuf=use_lbuf, use_rbuf=use_rbuf)

    # Activation stays in HBM (manual halo DMA); weights/scales are placed once
    # in VMEM (single resident copy, no double buffering).
    vmem_spec = pl.BlockSpec(memory_space=pltpu.MemorySpace.VMEM)
    in_specs = [pl.BlockSpec(memory_space=pl.ANY),
                vmem_spec, vmem_spec, vmem_spec]
    args = [x, w1, lyr['s1'], lyr['b1']]
    if two:
        in_specs += [vmem_spec, vmem_spec, vmem_spec]
        args += [lyr['w2'], lyr['s2'], lyr['b2']]

    scratch = [pltpu.VMEM((2, TL, Cin), x.dtype),
               pltpu.SemaphoreType.DMA((2, n_copies))]
    if use_lbuf:
        scratch.append(pltpu.VMEM((2, lp, Cin), x.dtype))
    if use_rbuf:
        scratch.append(pltpu.VMEM((2, rp, Cin), x.dtype))
    if K > 1:
        scratch.append(pltpu.VMEM((TLH, Cin), jnp.float32))
    if pool > 1:
        scratch.append(pltpu.VMEM((TL, Cout), jnp.float32))

    flops = 2 * B * L * K * Cin * C1 + (2 * B * L * C1 * Cout if two else 0)
    transcend = (B * L * Cin + (B * L * C1 if two else 0)
                 + (B * L * Cout if lyr['softplus'] else 0))
    bytes_acc = (x.size * in_it + w_bytes + B * Lo * Cout * out_it)

    return pl.pallas_call(
        kernel,
        out_shape=jax.ShapeDtypeStruct((B, Lo, Cout), out_dtype),
        grid_spec=pltpu.PrefetchScalarGridSpec(
            num_scalar_prefetch=0,
            grid=(P, B, NTp),
            in_specs=in_specs,
            out_specs=pl.BlockSpec((1, TL // pool, Cout),
                                   lambda p, b, t: (b, p * NTp + t, 0)),
            scratch_shapes=scratch),
        compiler_params=pltpu.CompilerParams(
            # Leading L-split axis sharded across TensorCores (works even for
            # B=1); batch and tile axes are sequential (manual prefetch chain).
            dimension_semantics=("parallel", "arbitrary", "arbitrary"),
            vmem_limit_bytes=vmem_limit),
        cost_estimate=pl.CostEstimate(flops=int(flops),
                                      transcendentals=int(transcend),
                                      bytes_accessed=int(bytes_acc)),
    )(*args)


# ----------------------------------------------------------------------------
# Deterministic parameter construction (synthetic; no checkpoint loading).
# Weights are stored lane-padded (channels -> multiples of 128) and in bf16.
# ----------------------------------------------------------------------------
def _init_conv_params(key, K, c_in, c_out, c_in_store, c_out_pad, *, has_bn=True):
    kw, kb, kg, kbeta, km, kv = jax.random.split(key, 6)
    w = jax.random.normal(kw, (K, c_in, c_out), jnp.float32) / np.sqrt(K * c_in)
    b = 0.02 * jax.random.normal(kb, (c_out,), jnp.float32)
    if has_bn:  # eval-mode BatchNorm1d(eps=1e-5) folded into scale/bias
        gamma = 1.0 + 0.1 * jax.random.normal(kg, (c_out,), jnp.float32)
        beta = 0.1 * jax.random.normal(kbeta, (c_out,), jnp.float32)
        mean = 0.1 * jax.random.normal(km, (c_out,), jnp.float32)
        var = jnp.abs(jax.random.normal(kv, (c_out,), jnp.float32)) + 0.5
        scale = gamma / jnp.sqrt(var + 1e-5)
        bias = (b - mean) * scale + beta
    else:
        scale = jnp.ones((c_out,), jnp.float32)
        bias = b
    w_p = jnp.zeros((K, c_in_store, c_out_pad), jnp.float32)
    w_p = w_p.at[:, :c_in, :c_out].set(w).astype(jnp.bfloat16)
    s_p = jnp.ones((1, c_out_pad), jnp.float32).at[:, :c_out].set(scale[None, :])
    b_p = jnp.zeros((1, c_out_pad), jnp.float32).at[:, :c_out].set(bias[None, :])
    return w_p, s_p, b_p


class Basenji2Pallas:
    """Mirrors Basenji2.build_model() / forward() for the given params dict."""

    def __init__(self, params, key, max_tile_len=None):
        self.params = params
        self.max_tile_len = max_tile_len
        self.layers = []
        ki = iter(jax.random.split(key, 256))

        self.first_K = None      # first conv's kernel size (wrapper im2col)
        self.first_pack_C = None
        c_in = 4                 # logical channels
        c_in_store = 4           # stored (lane-padded) channels

        def add_conv(K, cout, *, dilation=1, pool=1, softplus=False,
                     out_dtype=jnp.bfloat16, key=None, has_bn=True):
            nonlocal c_in, c_in_store
            cout_p = _round_up(cout)
            if self.first_K is None:
                # First conv over one-hot DNA: the K taps are packed into the
                # lane axis by the wrapper (_preprocess), so the kernel sees a
                # lane-dense K=1 conv with Cin = round_up(K*4, 128).
                self.first_K = K
                pack_c = _round_up(K * c_in)
                self.first_pack_C = pack_c
                w, s, b = _init_conv_params(key, K, c_in, cout, c_in, cout_p,
                                            has_bn=has_bn)
                w = w.reshape(K * c_in, cout_p)
                w = jnp.zeros((pack_c, cout_p), jnp.bfloat16).at[:K * c_in].set(w)
                self.layers.append(dict(
                    kind='conv', K=1, dilation=1, pool=pool,
                    w1=w[None], s1=s, b1=b, w2=None, s2=None, b2=None,
                    residual=False, softplus=softplus, out_dtype=out_dtype))
            else:
                w, s, b = _init_conv_params(key, K, c_in, cout, c_in_store,
                                            cout_p, has_bn=has_bn)
                self.layers.append(dict(
                    kind='conv', K=K, dilation=dilation, pool=pool,
                    w1=w, s1=s, b1=b, w2=None, s2=None, b2=None,
                    residual=False, softplus=softplus, out_dtype=out_dtype))
            c_in, c_in_store = cout, cout_p

        for bp in params['trunk']:
            name = bp['name']
            if name == 'conv_block':
                add_conv(bp.get('kernel_size', 1), bp['filters'],
                         pool=bp.get('pool_size', 1), key=next(ki))
            elif name == 'conv_tower':
                f = float(bp['filters_init'])
                for _ in range(bp['repeat']):
                    add_conv(bp['kernel_size'], int(round(f)),
                             pool=bp.get('pool_size', 1), key=next(ki))
                    f *= bp.get('filters_mult', 1.0)
            elif name == 'dilated_residual':
                rate = 1.0
                c_mid = bp['filters']
                c_mid_p = _round_up(c_mid)
                for _ in range(bp['repeat']):
                    d = int(round(rate))
                    w1, s1, b1 = _init_conv_params(next(ki), bp['kernel_size'],
                                                   c_in, c_mid, c_in_store,
                                                   c_mid_p)
                    w2, s2, b2 = _init_conv_params(next(ki), 1, c_mid, c_in,
                                                   c_mid_p, c_in_store)
                    # Fused pair: dilated conv -> 1x1 conv -> +residual.
                    # TODO(synk): dropout(p=0.3) is inference-mode identity here.
                    self.layers.append(dict(
                        kind='conv', K=bp['kernel_size'], dilation=d, pool=1,
                        w1=w1, s1=s1, b1=b1, w2=w2[0], s2=s2, b2=b2,
                        residual=True, softplus=False, out_dtype=jnp.bfloat16))
                    rate *= bp.get('rate_mult', 1.0)
            elif name == 'cropping_1d':
                self.layers.append(dict(kind='crop', crop=bp['cropping']))
            else:
                raise ValueError(f'unknown block {name}')

        # Trunk's trailing GELU is fused as the pre-activation of the head dense.
        # TODO(synk): return_only_embeddings=True path not exposed separately.
        head = params['head_human']
        units = head['units']
        units_p = _round_up(units)
        w, s, b = _init_conv_params(next(ki), 1, c_in, units, c_in_store,
                                    units_p, has_bn=False)
        self.layers.append(dict(
            kind='conv', K=1, dilation=1, pool=1,
            w1=w, s1=s, b1=b, w2=None, s2=None, b2=None,
            residual=False, softplus=(head.get('activation') == 'softplus'),
            out_dtype=jnp.float32))
        self.n_targets = units

    def _preprocess(self, x_ncl):
        """NCL -> NLC, plus wrapper-side im2col of the tiny 4-channel input:
        the first conv's K taps are packed into a lane-dense 128-wide operand."""
        x = jnp.transpose(x_ncl, (0, 2, 1)).astype(jnp.float32)   # (B, L, 4)
        B, L, C = x.shape
        K = self.first_K
        halo = K - 1
        lp = halo // 2
        xp = jnp.pad(x, ((0, 0), (lp, halo - lp), (0, 0))) if halo else x
        taps = [xp[:, k:k + L, :] for k in range(K)]
        packed = jnp.concatenate(taps, axis=-1)                   # (B, L, K*4)
        packed = jnp.pad(packed,
                         ((0, 0), (0, 0), (0, self.first_pack_C - K * C)))
        return packed.astype(jnp.bfloat16)

    def __call__(self, x_ncl):
        x = self._preprocess(x_ncl)
        for lyr in self.layers:
            if lyr['kind'] == 'crop':
                c = lyr['crop']
                x = x[:, c:-c, :]
                continue
            x = fused_block(x, lyr, max_tile_len=self.max_tile_len)
        return x[:, :, :self.n_targets]    # crop lane padding of the head


# ----------------------------------------------------------------------------
# Pure-JAX reference (identical numerics: bf16 MXU operands, f32 accumulation,
# folded BN, bf16 inter-layer activations) for verification.
# ----------------------------------------------------------------------------
def _ref_layer(x, lyr):
    K, d, pool = lyr['K'], lyr['dilation'], lyr['pool']
    two = lyr['w2'] is not None
    B, L, _ = x.shape
    halo = d * (K - 1)
    lp = halo // 2

    xf = x.astype(jnp.float32)
    h = _gelu(xf)
    if halo:
        h = jnp.pad(h, ((0, 0), (lp, halo - lp), (0, 0)))
    hb = h.astype(jnp.bfloat16)

    w1 = lyr['w1']
    C1 = w1.shape[-1]
    acc = jnp.zeros((B, L, C1), jnp.float32)
    for k in range(K):
        acc = acc + jnp.einsum('blc,cf->blf', hb[:, k * d:k * d + L, :], w1[k],
                               preferred_element_type=jnp.float32)
    y = acc * lyr['s1'][None] + lyr['b1'][None]

    if two:
        h2 = _gelu(y).astype(jnp.bfloat16)
        y = jnp.einsum('blc,cf->blf', h2, lyr['w2'],
                       preferred_element_type=jnp.float32)
        y = y * lyr['s2'][None] + lyr['b2'][None]

    if lyr['residual']:
        y = y + xf
    if lyr['softplus']:
        y = _softplus(y)
    if pool > 1:
        y = jnp.max(y.reshape(B, L // pool, pool, y.shape[-1]), axis=2)
    return y.astype(lyr['out_dtype'])


def reference_forward(model, x_ncl):
    x = model._preprocess(x_ncl)
    for lyr in model.layers:
        if lyr['kind'] == 'crop':
            c = lyr['crop']
            x = x[:, c:-c, :]
            continue
        x = _ref_layer(x, lyr)
    return x[:, :, :model.n_targets]


# ----------------------------------------------------------------------------
if __name__ == "__main__":
    # Small Basenji2-style params dict (same block structure as the real
    # params.json, scaled down).
    PARAMS = dict(
        seq_length=128,
        activation='gelu',
        norm_type='batch',
        bn_momentum=0.90,
        padding='same',
        trunk=[
            dict(name='conv_block', filters=32, kernel_size=5, pool_size=2),
            dict(name='conv_tower', filters_init=32, filters_mult=1.5,
                 kernel_size=5, pool_size=2, repeat=2),
            dict(name='dilated_residual', filters=24, kernel_size=3,
                 rate_mult=2.0, repeat=2, dropout=0.3),
            dict(name='cropping_1d', cropping=2),
            dict(name='conv_block', filters=64, kernel_size=1, dropout=0.05),
        ],
        head_human=dict(name='dense', units=8, activation='softplus'),
    )

    key = jax.random.PRNGKey(0)
    k_params, k_x = jax.random.split(key)

    # max_tile_len=64 forces multi-L-tile windows even at toy sizes so the halo
    # DMA, cross-batch prefetch and megacore L-split paths are all exercised
    # (real runs would let the VMEM budget pick TL automatically).
    model = Basenji2Pallas(PARAMS, k_params, max_tile_len=64)

    B = 2
    # Real Basenji2 input is one-hot DNA (B, 4, seq_length); random values
    # exercise the identical compute path.
    x = jax.random.normal(k_x, (B, 4, PARAMS['seq_length']), jnp.float32)

    out = jax.block_until_ready(model(x))
    ref = jax.block_until_ready(reference_forward(model, x))

    expected_L = 12   # 128 ->pool2-> 64 ->pool2-> 32 ->pool2-> 16 -> crop 2*2 -> 12
    assert out.shape == (B, expected_L, PARAMS['head_human']['units']), out.shape
    assert ref.shape == out.shape
    np.testing.assert_allclose(np.asarray(out), np.asarray(ref),
                               atol=2e-2, rtol=2e-2)

    print("KERNEL_OK")
</pallas_src>

<mosaic_0001>
module attributes {stable_mosaic.version = 11 : i64} {
  func.func @kernel(%arg0: i32, %arg1: i32, %arg2: i32, %arg3: memref<2x128x128xbf16, #tpu.memory_space<any>>, %arg4: memref<1x128x128xbf16, #tpu.memory_space<vmem>>, %arg5: memref<1x128xf32, #tpu.memory_space<vmem>>, %arg6: memref<1x128xf32, #tpu.memory_space<vmem>>, %arg7: memref<1x32x128xbf16, #tpu.memory_space<vmem>>, %arg8: memref<2x64x128xbf16, #tpu.memory_space<vmem>>, %arg9: memref<2x1x!tpu.dma_semaphore, #tpu.memory_space<semaphore_mem>>, %arg10: memref<64x128xf32, #tpu.memory_space<vmem>>) attributes {dimension_semantics = [#tpu.dimension_semantics<parallel>, #tpu.dimension_semantics<arbitrary>, #tpu.dimension_semantics<arbitrary>], iteration_bounds = array<i64: 2, 2, 1>, scalar_prefetch = 0 : i64, scratch_operands = 3 : i64, tpu.core_type = #tpu.core_type<tc>, window_params = [{}, {pipeline_mode = #tpu.pipeline_mode<synchronous>, transform_indices = @transform_1, window_bounds = array<i64: 1, 128, 128>}, {pipeline_mode = #tpu.pipeline_mode<synchronous>, transform_indices = @transform_2, window_bounds = array<i64: 1, 128>}, {pipeline_mode = #tpu.pipeline_mode<synchronous>, transform_indices = @transform_3, window_bounds = array<i64: 1, 128>}, {transform_indices = @transform_4, window_bounds = array<i64: 1, 32, 128>}]} {
    %c1_i32 = arith.constant 1 : i32
    %0 = arith.muli %arg0, %c1_i32 : i32
    %1 = arith.addi %0, %arg2 : i32
    %c1_i32_0 = arith.constant 1 : i32
    %2 = arith.muli %arg1, %c1_i32_0 : i32
    %3 = arith.addi %2, %arg2 : i32
    %c2_i32 = arith.constant 2 : i32
    %c0_i32 = arith.constant 0 : i32
    %4 = arith.cmpi eq, %c2_i32, %c0_i32 : i32
    %c1_i32_1 = arith.constant 1 : i32
    %5 = arith.select %4, %c1_i32_1, %c2_i32 : i32
    %6 = arith.remsi %3, %5 : i32
    %c0_i32_2 = arith.constant 0 : i32
    %7 = arith.cmpi ne, %6, %c0_i32_2 : i32
    %c0_i32_3 = arith.constant 0 : i32
    %8 = arith.cmpi slt, %6, %c0_i32_3 : i32
    %c0_i32_4 = arith.constant 0 : i32
    %9 = arith.cmpi slt, %5, %c0_i32_4 : i32
    %10 = arith.xori %8, %9 : i1
    %11 = arith.andi %10, %7 : i1
    %12 = arith.addi %6, %5 : i32
    %13 = arith.select %11, %12, %6 : i32
    %c0_i32_5 = arith.constant 0 : i32
    %14 = arith.cmpi eq, %3, %c0_i32_5 : i32
    %15 = arith.extui %14 : i1 to i32
    %c0_i32_6 = arith.constant 0 : i32
    %16 = arith.cmpi ne, %15, %c0_i32_6 : i32
    scf.if %16 {
      %c64_i32_45 = arith.constant 64 : i32
      %91 = arith.muli %1, %c64_i32_45 : i32
      %92 = tpu.assume_multiple %91, 64 : i32
      %c0_i32_46 = arith.constant 0 : i32
      %c0_i32_47 = arith.constant 0 : i32
      %93 = tpu.memref_slice %arg3[%arg1, %92, %c0_i32_47] : memref<2x128x128xbf16, #tpu.memory_space<any>> -> memref<1x64x128xbf16, #tpu.memory_space<any>>
      %94 = tpu.memref_squeeze %93 : memref<1x64x128xbf16, #tpu.memory_space<any>> -> memref<64x128xbf16, #tpu.memory_space<any>>
      %c0_i32_48 = arith.constant 0 : i32
      %c0_i32_49 = arith.constant 0 : i32
      %95 = tpu.memref_slice %arg8[%13, %c0_i32_48, %c0_i32_49] : memref<2x64x128xbf16, #tpu.memory_space<vmem>> -> memref<1x64x128xbf16, #tpu.memory_space<vmem>>
      %96 = tpu.memref_squeeze %95 : memref<1x64x128xbf16, #tpu.memory_space<vmem>> -> memref<64x128xbf16, #tpu.memory_space<vmem>>
      %97 = tpu.memref_slice %arg9[%13, %c0_i32_46] : memref<2x1x!tpu.dma_semaphore, #tpu.memory_space<semaphore_mem>> -> memref<1x1x!tpu.dma_semaphore, #tpu.memory_space<semaphore_mem>>
      %98 = tpu.memref_squeeze %97 : memref<1x1x!tpu.dma_semaphore, #tpu.memory_space<semaphore_mem>> -> memref<!tpu.dma_semaphore, #tpu.memory_space<semaphore_mem>>
      tpu.enqueue_dma source(%94 : memref<64x128xbf16, #tpu.memory_space<any>>) target(%96 : memref<64x128xbf16, #tpu.memory_space<vmem>>) target_semaphore(%98 : memref<!tpu.dma_semaphore, #tpu.memory_space<semaphore_mem>>)
    } else {
    }
    %c1_i32_7 = arith.constant 1 : i32
    %17 = arith.addi %3, %c1_i32_7 : i32
    %c2_i32_8 = arith.constant 2 : i32
    %18 = arith.cmpi slt, %17, %c2_i32_8 : i32
    %19 = arith.extui %18 : i1 to i32
    %c0_i32_9 = arith.constant 0 : i32
    %20 = arith.cmpi ne, %19, %c0_i32_9 : i32
    scf.if %20 {
      %c1_i32_45 = arith.constant 1 : i32
      %91 = arith.addi %arg2, %c1_i32_45 : i32
      %c1_i32_46 = arith.constant 1 : i32
      %92 = arith.cmpi slt, %91, %c1_i32_46 : i32
      %c1_i32_47 = arith.constant 1 : i32
      %93 = arith.addi %arg2, %c1_i32_47 : i32
      %c0_i32_48 = arith.constant 0 : i32
      %94 = arith.select %92, %93, %c0_i32_48 : i32
      %c1_i32_49 = arith.constant 1 : i32
      %95 = arith.addi %arg2, %c1_i32_49 : i32
      %c1_i32_50 = arith.constant 1 : i32
      %96 = arith.cmpi slt, %95, %c1_i32_50 : i32
      %c1_i32_51 = arith.constant 1 : i32
      %97 = arith.addi %arg1, %c1_i32_51 : i32
      %98 = arith.select %96, %arg1, %97 : i32
      %c1_i32_52 = arith.constant 1 : i32
      %99 = arith.muli %arg0, %c1_i32_52 : i32
      %100 = arith.addi %99, %94 : i32
      %c1_i32_53 = arith.constant 1 : i32
      %101 = arith.subi %c1_i32_53, %13 : i32
      %c64_i32_54 = arith.constant 64 : i32
      %102 = arith.muli %100, %c64_i32_54 : i32
      %103 = tpu.assume_multiple %102, 64 : i32
      %c0_i32_55 = arith.constant 0 : i32
      %c0_i32_56 = arith.constant 0 : i32
      %104 = tpu.memref_slice %arg3[%98, %103, %c0_i32_56] : memref<2x128x128xbf16, #tpu.memory_space<any>> -> memref<1x64x128xbf16, #tpu.memory_space<any>>
      %105 = tpu.memref_squeeze %104 : memref<1x64x128xbf16, #tpu.memory_space<any>> -> memref<64x128xbf16, #tpu.memory_space<any>>
      %c0_i32_57 = arith.constant 0 : i32
      %c0_i32_58 = arith.constant 0 : i32
      %106 = tpu.memref_slice %arg8[%101, %c0_i32_57, %c0_i32_58] : memref<2x64x128xbf16, #tpu.memory_space<vmem>> -> memref<1x64x128xbf16, #tpu.memory_space<vmem>>
      %107 = tpu.memref_squeeze %106 : memref<1x64x128xbf16, #tpu.memory_space<vmem>> -> memref<64x128xbf16, #tpu.memory_space<vmem>>
      %108 = tpu.memref_slice %arg9[%101, %c0_i32_55] : memref<2x1x!tpu.dma_semaphore, #tpu.memory_space<semaphore_mem>> -> memref<1x1x!tpu.dma_semaphore, #tpu.memory_space<semaphore_mem>>
      %109 = tpu.memref_squeeze %108 : memref<1x1x!tpu.dma_semaphore, #tpu.memory_space<semaphore_mem>> -> memref<!tpu.dma_semaphore, #tpu.memory_space<semaphore_mem>>
      tpu.enqueue_dma source(%105 : memref<64x128xbf16, #tpu.memory_space<any>>) target(%107 : memref<64x128xbf16, #tpu.memory_space<vmem>>) target_semaphore(%109 : memref<!tpu.dma_semaphore, #tpu.memory_space<semaphore_mem>>)
    } else {
    }
    %c64_i32 = arith.constant 64 : i32
    %21 = arith.muli %1, %c64_i32 : i32
    %22 = tpu.assume_multiple %21, 64 : i32
    %c0_i32_10 = arith.constant 0 : i32
    %c0_i32_11 = arith.constant 0 : i32
    %23 = tpu.memref_slice %arg3[%arg1, %22, %c0_i32_11] : memref<2x128x128xbf16, #tpu.memory_space<any>> -> memref<1x64x128xbf16, #tpu.memory_space<any>>
    %24 = tpu.memref_squeeze %23 : memref<1x64x128xbf16, #tpu.memory_space<any>> -> memref<64x128xbf16, #tpu.memory_space<any>>
    %c0_i32_12 = arith.constant 0 : i32
    %c0_i32_13 = arith.constant 0 : i32
    %25 = tpu.memref_slice %arg8[%13, %c0_i32_12, %c0_i32_13] : memref<2x64x128xbf16, #tpu.memory_space<vmem>> -> memref<1x64x128xbf16, #tpu.memory_space<vmem>>
    %26 = tpu.memref_squeeze %25 : memref<1x64x128xbf16, #tpu.memory_space<vmem>> -> memref<64x128xbf16, #tpu.memory_space<vmem>>
    %27 = tpu.memref_slice %arg9[%13, %c0_i32_10] : memref<2x1x!tpu.dma_semaphore, #tpu.memory_space<semaphore_mem>> -> memref<1x1x!tpu.dma_semaphore, #tpu.memory_space<semaphore_mem>>
    %28 = tpu.memref_squeeze %27 : memref<1x1x!tpu.dma_semaphore, #tpu.memory_space<semaphore_mem>> -> memref<!tpu.dma_semaphore, #tpu.memory_space<semaphore_mem>>
    tpu.wait_dma2 semaphore(%28 : memref<!tpu.dma_semaphore, #tpu.memory_space<semaphore_mem>>) src(%24 : memref<64x128xbf16, #tpu.memory_space<any>>) dst(%26 : memref<64x128xbf16, #tpu.memory_space<vmem>>)
    %29 = arith.index_cast %13 : i32 to index
    %c0 = arith.constant 0 : index
    %c0_14 = arith.constant 0 : index
    %30 = vector.load %arg8[%29, %c0, %c0_14] : memref<2x64x128xbf16, #tpu.memory_space<vmem>>, vector<1x64x128xbf16>
    %31 = vector.shape_cast %30 : vector<1x64x128xbf16> to vector<64x128xbf16>
    %32 = arith.extf %31 : vector<64x128xbf16> to vector<64x128xf32>
    %cst = arith.constant 5.000000e-01 : f32
    %33 = vector.broadcast %cst : f32 to vector<64x128xf32>
    %34 = arith.mulf %33, %32 : vector<64x128xf32>
    %cst_15 = arith.constant 0.707106769 : f32
    %35 = vector.broadcast %cst_15 : f32 to vector<64x128xf32>
    %36 = arith.mulf %32, %35 : vector<64x128xf32>
    %37 = math.absf %36 : vector<64x128xf32>
    %cst_16 = arith.constant 0.327591091 : f32
    %38 = vector.broadcast %cst_16 : f32 to vector<64x128xf32>
    %39 = arith.mulf %38, %37 : vector<64x128xf32>
    %cst_17 = arith.constant 1.000000e+00 : f32
    %40 = vector.broadcast %cst_17 : f32 to vector<64x128xf32>
    %41 = arith.addf %40, %39 : vector<64x128xf32>
    %cst_18 = arith.constant 1.000000e+00 : f32
    %42 = vector.broadcast %cst_18 : f32 to vector<64x128xf32>
    %43 = arith.divf %42, %41 : vector<64x128xf32>
    %cst_19 = arith.constant 1.06140542 : f32
    %44 = vector.broadcast %cst_19 : f32 to vector<64x128xf32>
    %45 = arith.mulf %44, %43 : vector<64x128xf32>
    %cst_20 = arith.constant -1.45315206 : f32
    %46 = vector.broadcast %cst_20 : f32 to vector<64x128xf32>
    %47 = arith.addf %45, %46 : vector<64x128xf32>
    %48 = arith.mulf %47, %43 : vector<64x128xf32>
    %cst_21 = arith.constant 1.42141378 : f32
    %49 = vector.broadcast %cst_21 : f32 to vector<64x128xf32>
    %50 = arith.addf %48, %49 : vector<64x128xf32>
    %51 = arith.mulf %50, %43 : vector<64x128xf32>
    %cst_22 = arith.constant -0.284496725 : f32
    %52 = vector.broadcast %cst_22 : f32 to vector<64x128xf32>
    %53 = arith.addf %51, %52 : vector<64x128xf32>
    %54 = arith.mulf %53, %43 : vector<64x128xf32>
    %cst_23 = arith.constant 0.254829586 : f32
    %55 = vector.broadcast %cst_23 : f32 to vector<64x128xf32>
    %56 = arith.addf %54, %55 : vector<64x128xf32>
    %57 = arith.mulf %56, %43 : vector<64x128xf32>
    %cst_24 = arith.constant 0.000000e+00 : f32
    %58 = vector.broadcast %cst_24 : f32 to vector<64x128xf32>
    %59 = arith.subf %58, %37 : vector<64x128xf32>
    %60 = arith.mulf %59, %37 : vector<64x128xf32>
    %61 = math.exp %60 : vector<64x128xf32>
    %62 = arith.mulf %57, %61 : vector<64x128xf32>
    %cst_25 = arith.constant 1.000000e+00 : f32
    %63 = vector.broadcast %cst_25 : f32 to vector<64x128xf32>
    %64 = arith.subf %63, %62 : vector<64x128xf32>
    %cst_26 = arith.constant 0.000000e+00 : f32
    %65 = vector.broadcast %cst_26 : f32 to vector<64x128xf32>
    %66 = arith.cmpf oge, %36, %65 : vector<64x128xf32>
    %cst_27 = arith.constant 0.000000e+00 : f32
    %67 = vector.broadcast %cst_27 : f32 to vector<64x128xf32>
    %68 = arith.subf %67, %64 : vector<64x128xf32>
    %69 = arith.select %66, %64, %68 : vector<64x128xi1>, vector<64x128xf32>
    %cst_28 = arith.constant 1.000000e+00 : f32
    %70 = vector.broadcast %cst_28 : f32 to vector<64x128xf32>
    %71 = arith.addf %70, %69 : vector<64x128xf32>
    %72 = arith.mulf %34, %71 : vector<64x128xf32>
    %73 = arith.truncf %72 : vector<64x128xf32> to vector<64x128xbf16>
    %c0_29 = arith.constant 0 : index
    %c0_30 = arith.constant 0 : index
    %c0_31 = arith.constant 0 : index
    %74 = vector.load %arg4[%c0_29, %c0_30, %c0_31] : memref<1x128x128xbf16, #tpu.memory_space<vmem>>, vector<1x128x128xbf16>
    %75 = vector.shape_cast %74 : vector<1x128x128xbf16> to vector<128x128xbf16>
    %cst_32 = arith.constant dense<0.000000e+00> : vector<64x128xf32>
    %76 = tpu.matmul %73, %75, %cst_32 {dimension_numbers = #tpu.dot_dimension_numbers<[1], [0], [0], [1], [0, 0, 1, 1], [], []>} : vector<64x128xbf16>, vector<128x128xbf16>, vector<64x128xf32> -> vector<64x128xf32>
    %c0_33 = arith.constant 0 : index
    %c0_34 = arith.constant 0 : index
    %77 = vector.load %arg5[%c0_33, %c0_34] : memref<1x128xf32, #tpu.memory_space<vmem>>, vector<1x128xf32>
    %78 = vector.broadcast %77 : vector<1x128xf32> to vector<64x128xf32>
    %79 = arith.mulf %76, %78 : vector<64x128xf32>
    %c0_35 = arith.constant 0 : index
    %c0_36 = arith.constant 0 : index
    %80 = vector.load %arg6[%c0_35, %c0_36] : memref<1x128xf32, #tpu.memory_space<vmem>>, vector<1x128xf32>
    %81 = vector.broadcast %80 : vector<1x128xf32> to vector<64x128xf32>
    %82 = arith.addf %79, %81 : vector<64x128xf32>
    %c0_37 = arith.constant 0 : index
    %c0_38 = arith.constant 0 : index
    %83 = vector.load %arg10[%c0_37, %c0_38] : memref<64x128xf32, #tpu.memory_space<vmem>>, vector<64x128xf32>
    tpu.vector_store %arg10[%c0_37, %c0_38], %82 {strides = array<i32>} : memref<64x128xf32, #tpu.memory_space<vmem>>, vector<64x128xf32>,
    %c0_39 = arith.constant 0 : index
    %c0_40 = arith.constant 0 : index
    %84 = tpu.strided_load %arg10[%c0_39, %c0_40] {strides = array<i32: 2, 1>} : memref<64x128xf32, #tpu.memory_space<vmem>>, vector<32x128xf32>
    %c1 = arith.constant 1 : index
    %c0_41 = arith.constant 0 : index
    %85 = tpu.strided_load %arg10[%c1, %c0_41] {strides = array<i32: 2, 1>} : memref<64x128xf32, #tpu.memory_space<vmem>>, vector<32x128xf32>
    %86 = arith.maximumf %84, %85 : vector<32x128xf32>
    %87 = arith.truncf %86 : vector<32x128xf32> to vector<32x128xbf16>
    %c0_42 = arith.constant 0 : index
    %c0_43 = arith.constant 0 : index
    %c0_44 = arith.constant 0 : index
    %88 = vector.load %arg7[%c0_42, %c0_43, %c0_44] : memref<1x32x128xbf16, #tpu.memory_space<vmem>>, vector<1x32x128xbf16>
    %89 = vector.shape_cast %88 : vector<1x32x128xbf16> to vector<32x128xbf16>
    %90 = vector.shape_cast %87 : vector<32x128xbf16> to vector<1x32x128xbf16>
    tpu.vector_store %arg7[%c0_42, %c0_43, %c0_44], %90 {strides = array<i32>} : memref<1x32x128xbf16, #tpu.memory_space<vmem>>, vector<1x32x128xbf16>,
    return
  }
  func.func @transform_1(%arg0: i32, %arg1: i32, %arg2: i32) -> (i32, i32, i32) {
    %c0_i32 = arith.constant 0 : i32
    %c0_i32_0 = arith.constant 0 : i32
    %c0_i32_1 = arith.constant 0 : i32
    %c0_i32_2 = arith.constant 0 : i32
    return %c0_i32, %c0_i32_0, %c0_i32_1 : i32, i32, i32
  }
  func.func @transform_2(%arg0: i32, %arg1: i32, %arg2: i32) -> (i32, i32) {
    %c0_i32 = arith.constant 0 : i32
    %c0_i32_0 = arith.constant 0 : i32
    %c0_i32_1 = arith.constant 0 : i32
    return %c0_i32, %c0_i32_0 : i32, i32
  }
  func.func @transform_3(%arg0: i32, %arg1: i32, %arg2: i32) -> (i32, i32) {
    %c0_i32 = arith.constant 0 : i32
    %c0_i32_0 = arith.constant 0 : i32
    %c0_i32_1 = arith.constant 0 : i32
    return %c0_i32, %c0_i32_0 : i32, i32
  }
  func.func @transform_4(%arg0: i32, %arg1: i32, %arg2: i32) -> (i32, i32, i32) {
    %c1_i32 = arith.constant 1 : i32
    %0 = arith.muli %arg0, %c1_i32 : i32
    %1 = arith.addi %0, %arg2 : i32
    %c0_i32 = arith.constant 0 : i32
    %c0_i32_0 = arith.constant 0 : i32
    return %arg1, %1, %c0_i32 : i32, i32, i32
  }
}

</mosaic_0001>

<bundles_post_ra>
// kernel: tpu_custom_call.1
= control target key start
LH: loop header
LB: loop body
LE: loop exit
PB: predicated region body
PF: predicated region fallthrough
CT: control target
= control target key end

     0   :  { %s1745_s0 = inlined_call_operand.hbm [shape: bf16[2,128,128], index: 0, kind: input, shape index: {}]   ;;  %s1746_s1 = inlined_call_operand.hbm [shape: bf16[1,128,128], index: 1, kind: input, shape index: {}]   ;;  %s1747_s2 = inlined_call_operand.vmem [shape: f32[1,128], index: 2, kind: input, shape index: {}]   ;;  %s1748_s3 = inlined_call_operand.vmem [shape: f32[1,128], index: 3, kind: input, shape index: {}]   ;;  %s1749_s4 = inlined_call_operand.hbm [shape: bf16[2,64,128], index: 4, kind: output, shape index: {}]  }
   0x1   :  { %1761 = sst [smem:[#allocation23_spill]] %s1746_s1 }
   0x2   :  { %9 = vsyncpa [#allocation6], 0 }
   0x3   :  { %10 = vsyncpa [#allocation7], 0 }
   0x4   :  { %12 = vsyncpa [#allocation7 + $0x1], 0  ;;  %s1307_s15 = smov 0   ;;  %s1309_s16 = smov 0  }
   0x5   :  { %s1311_s17 = smov 0   ;;  %s1313_s18 = smov 0  }
   0x6   :  { %s1315_s19 = smov 0   ;;  %s1317_s20 = smov 0  }
   0x7   :  { %s1319_s21 = smov 0   ;;  %s1321_s22 = smov 0  }
   0x8 LB: > { %1762 = sst [smem:[#allocation18_spill]] %s1265_s20  ;;  %s839_s23 = sadd.s32 4294967295, %s1273_s22   ;;  %s1273_s22 = sphi %s1321_s22, %s18_s22   ;;  %s1269_s21 = sphi %s1319_s21, %s1785_s21   ;;  %s1265_s20 = sphi %s1317_s20, %s1784_s20   ;;  %s1261_s19 = sphi %s1315_s19, %s1783_s19   ;;  %s1257_s18 = sphi %s1313_s18, %s1782_s18   ;;  %s1253_s17 = sphi %s1311_s17, %s1788_s17   ;;  %s1249_s16 = sphi %s1309_s16, %s1787_s16   ;;  %s1245_s15 = sphi %s1307_s15, %s1786_s15  }
   0x9   : > { %1763 = sst [smem:[#allocation19_spill]] %s1269_s21  ;;  %s840_s24 = sadd.s32 4294967294, %s1273_s22  }
   0xa   : > { %s33_s25 = sadd.s32 1, %s1265_s20  ;;  %s37_s26 = sadd.s32 1, %s1269_s21 }
   0xb   : > { %p35_p0 = scmp.ge.s32.totalorder %s33_s25, 2  ;;  %s111_s27 = sadd.s32 1, %s1253_s17 }
   0xc   : > { %p121_p1 = scmp.ne.s32.totalorder %s1253_s17, %s1249_s16  ;;  %p122_p2 = scmp.eq.s32.totalorder %s839_s23, 3 }
   0xd   : > { %s1790_s25 = smov (%p35_p0, %s33_s25), 0  ;;  %s1792_s26 = smov (!%p35_p0, %s37_s26), %s1269_s21 }
   0xe   : > { %1764 = sst [smem:[#allocation20_spill]] %s1790_s25  ;;  %s106_s28 = ssub.s32 %s1265_s20, %s1790_s25 }
   0xf   : > { %p1359_p3 = por %p122_p2, %p121_p1  ;;  %p39_p4 = scmp.ge.s32.totalorder %s1792_s26, 2 }
  0x10   : > { %p127_p5 = scmp.ne.s32.totalorder %s1249_s16, %s1245_s15  ;;  %p128_p6 = scmp.eq.s32.totalorder %s840_s24, 3 }
  0x11   : > { %s1765_s29 = scalar_select %p1359_p3, 1, 0 }
  0x12   : > { %p841_p7 = scmp.ge.s32.totalorder %s1273_s22, 1  ;;  %s1794_s26 = smov (%p39_p4, %s1792_s26), 0 }
  0x13   : > { %1766 = sst [smem:[#allocation21_spill]] %s1794_s26  ;;  %p1368_p8 = por %p128_p6, %p127_p5 }
  0x14   : > { %p135_p9 = scmp.lt.s32.totalorder %s1273_s22, 5  ;;  %s107_s5 = ssub.s32 %s1269_s21, %s1794_s26 }
  0x15   : > { %s1767_s30 = scalar_select %p1368_p8, 1, 0 }
  0x16   : > { %s108_s6 = sor.u32 %s107_s5, %s106_s28  ;;  %p1375_p10 = pnand %p841_p7, %p135_p9 }
  0x17   : > { %p109_p11 = scmp.eq.s32.totalorder %s108_s6, 0  ;;  %p1379_p12 = scmp.eq.s32.totalorder %s839_s23, 0 }
  0x18   : > { %s1768_s7 = scalar_select %p1375_p10, 1, 0 }
  0x19   : > { %s1769_s8 = scalar_select %p1379_p12, 1, 0 }
  0x1a   : > { %p967_p13 = pneg %p1375_p10  ;;  %s1275_s10 = smov [#allocation5]  }
  0x1b   : > { %s1386_s9 = scalar_select %p109_p11, %s1253_s17, %s111_s27  }
  0x1c   : > { %s147_s11 = sshll.u32 %s1275_s10, 4  ;;  %p1390_p0 = pnand %p1379_p12, %p967_p13  ;;  %s148_s11 = int_to_ptr.vmem [resolvable:$true] %s147_s11 }
  0x1d   : > { %1770 = sst [smem:[#allocation22_spill]] %s1386_s9  ;;  %s1772_s1 = sld [smem:[#allocation23_spill]] }
  0x1e   : > { %p1091_p2 = pneg %p1390_p0 }
  0x23   : > { %s1089_s23 = scalar_lea.hbm %s1772_s1, 1024 }
  0x24   : > { %p1090_p1 = scmp.ne.s32.totalorder %s1772_s1, %s1089_s23  ;;  %p1096_p6 = scmp.lt.u32.totalorder %s1089_s23, %s1772_s1 }
  0x26   : > { %p1092_p4 = pnand %p1091_p2, %p1090_p1 }
  0x28   : > { %p1093_p5 = pneg %p1092_p4 }
  0x2a   : > { %p1098_p7 = pnand %p1096_p6, %p1093_p5 }
  0x2c   : > { %1101 = shalt.err (!%p1098_p7)
}
  0x2d   : > { %s1102_s6 = scalar_lea.vmem %s148_s11, 1024  ;;  %p1110_p8 = scmp.lt.s32.totalorder %s148_s11, %s148_s11 }
  0x2e   : > { %p1103_p9 = scmp.ne.s32.totalorder %s148_s11, %s1102_s6  ;;  %p1111_p3 = scmp.lt.s32.totalorder %s1102_s6, %s1102_s6 }
  0x30   : > { %p1105_p11 = pnand %p1103_p9, %p1091_p2  ;;  %p1112_p12 = por %p1111_p3, %p1110_p8 }
  0x32   : > { %p1106_p13 = pneg %p1105_p11 }
  0x34   : > { %p1113_p10 = pnand %p1112_p12, %p1106_p13 }
  0x36   : > { %1116 = shalt.err (!%p1113_p10)
}
  0x37   : > { %s1276_s10 = smov 64   ;;  %s1277_s13 = smov 4  }
  0x38   : > { %970 = dma.hbm_to_vmem [thread:$0]  (!%p1390_p0), %s1772_s1, 1024, %s148_s11, [#allocation6], %s1276_s10, %s1276_s10, %s1277_s13  }
  0x39   : > { %p1773_p1 = scmp.ne.s32.totalorder %s1768_s7, 0 }
  0x3a   : > { %p1774_p4 = scmp.ne.s32.totalorder (!%p1773_p1), %s1769_s8, 0 }
  0x3b   : > { %169 = sbr.rel (%p1773_p1) target bundleno = 443 (0x1bb), region = 32 }
  0x42   : > { %1234 = dma.done.wait (%p1774_p4), [#allocation6], 1024  }
  0x43   : > { %1236 = vsyncadd (%p1774_p4), [#allocation6], 4294966272  ;;  %s1754_s12 = sand.u32 1, %s1249_s16   ;;  %p193_p3 = scmp.lt.s32.totalorder %s1257_s18, 0 }
  0x44   : > { %s1420_s11 = sshll.u32 %s1754_s12, 4  ;;  %s194_s7 = ssub.s32 0, %s1257_s18 }
  0x45   : > { %s846_s23 = smin.u32 %s1257_s18, %s194_s7  ;;  %p977_p8 = scmp.eq.s32.totalorder %s1257_s18, 0 }
  0x46   : > { %s196_s28 = sand.u32 1, %s846_s23   ;;  %s850_s8 = sshll.u32 %s1261_s19, 6 }
  0x47   : > { %s197_s27 = ssub.s32 0, %s196_s28  ;;  %s851_s5 = sshll.u32 %s1257_s18, 4 }
  0x48   : > { %s1796_s27 = smov (!%p193_p3, %s197_s27), %s196_s28  ;;  %s210_s10 = sshra.s32 %s850_s8, 3 }
  0x49   : > { %p848_p10 = scmp.lt.s32.totalorder %s1796_s27, 0  ;;  %s203_s6 = sadd.s32 2, %s1796_s27 }
  0x4a   : > { %s887_s13 = sadd.s32 16, %s851_s5  ;;  %s213_s14 = sadd.s32 %s851_s5, %s210_s10 }
  0x4b   : > { %s1798_s6 = smov (!%p848_p10, %s203_s6), %s1796_s27  ;;  %s247_s24 = sadd.s32 %s887_s13, %s210_s10 }
  0x4c   : > { %s852_s12 = sshll.u32 %s213_s14, 6  ;;  %s885_s1 = sshll.u32 %s1798_s6, 5 }
  0x4d   : > { %s1433_s26 = scalar_lea.hbm %s1745_s0, %s852_s12  ;;  %s1435_s28 = scalar_lea.vmem [#allocation2], %s885_s1 }
  0x4e   : > { %s227_s27 = sshll.u32 %s1435_s28, 4  ;;  %s1440_s8 = sshll.u32 %s247_s24, 6  ;;  %s1438_s27 = int_to_ptr.vmem [resolvable:$true] %s227_s27 }
  0x4f   : > { %s1443_s5 = scalar_lea.sflag [#allocation3], %s1798_s6  ;;  %s1117_s10 = scalar_lea.hbm %s1433_s26, 512 }
  0x50   : > { %p1118_p12 = scmp.ne.s32.totalorder %s1433_s26, %s1117_s10  ;;  %s1758_s14 = scalar_lea.hbm %s1745_s0, 2048 }
  0x51   : > { %p1122_p5 = scmp.lt.u32.totalorder %s1433_s26, %s1745_s0  ;;  %p1123_p6 = scmp.lt.u32.totalorder %s1758_s14, %s1117_s10 }
  0x52   : > { %p1119_p0 = pnand %p1118_p12, %p977_p8  ;;  %p1125_p9 = scmp.lt.u32.totalorder %s1117_s10, %s1433_s26 }
  0x53   : > { %p1124_p7 = por %p1123_p6, %p1122_p5 }
  0x54   : > { %p1120_p2 = pneg %p1119_p0 }
  0x55   : > { %p1126_p11 = por %p1125_p9, %p1124_p7 }
  0x57   : > { %p1127_p13 = pnand %p1126_p11, %p1120_p2 }
  0x59   : > { %1130 = shalt.err (!%p1127_p13)  }
  0x5a   : > { %s1131_s24 = scalar_lea.vmem %s1438_s27, 512  ;;  %s1278_s12 = smov [#allocation2]  }
  0x5b   : > { %p1132_p1 = scmp.ne.s32.totalorder %s1438_s27, %s1131_s24  ;;  %s1135_s13 = sshll.u32 %s1278_s12, 4  ;;  %s1465_s13 = int_to_ptr.vmem [resolvable:$false] %s1135_s13 }
  0x5c   : > { %s1757_s25 = scalar_lea.vmem %s1465_s13, 1024  ;;  %p1138_p10 = scmp.lt.s32.totalorder %s1438_s27, %s1465_s13 }
  0x5d   : > { %p1133_p4 = pnand %p1132_p1, %p977_p8  ;;  %p1139_p12 = scmp.lt.s32.totalorder %s1757_s25, %s1131_s24 }
  0x5f   : > { %p1134_p3 = pneg %p1133_p4  ;;  %p1140_p0 = por %p1139_p12, %p1138_p10 }
  0x61   : > { %p1141_p2 = pnand %p1140_p0, %p1134_p3 }
  0x63   : > { %1144 = shalt.err (!%p1141_p2)  }
  0x64   : > { %962 = dma.hbm_to_vmem [thread:$0]  (%p977_p8), %s1433_s26, 512, %s1438_s27, %s1443_s5 }
  0x65   : > { %s231_s10 = sadd.s32 1, %s1257_s18  ;;  %s242_s7 = ssub.s32 1, %s1798_s6 }
  0x66   : > { %p1479_p5 = scmp.lt.s32.totalorder %s231_s10, 2  ;;  %s249_s12 = scalar_lea.hbm %s1745_s0, %s1440_s8 }
  0x67   : > { %s888_s25 = sshll.u32 %s242_s7, 5  ;;  %s253_s20 = scalar_lea.sflag [#allocation3], %s242_s7 }
  0x68   : > { %s252_s14 = scalar_lea.vmem [#allocation2], %s888_s25  ;;  %s1145_s9 = scalar_lea.hbm %s249_s12, 512 }
  0x69   : > { %s261_s21 = sshll.u32 %s252_s14, 4  ;;  %p1146_p6 = scmp.ne.s32.totalorder %s249_s12, %s1145_s9  ;;  %s262_s21 = int_to_ptr.vmem [resolvable:$true] %s261_s21 }
  0x6a   : > { %p1150_p9 = scmp.lt.u32.totalorder %s249_s12, %s1745_s0  ;;  %s1776_s23 = scalar_lea.hbm %s1745_s0, 2048 }
  0x6b   : > { %p1147_p8 = pnand %p1146_p6, %p1479_p5  ;;  %p1151_p11 = scmp.lt.u32.totalorder %s1776_s23, %s1145_s9 }
  0x6c   : > { %p1153_p1 = scmp.lt.u32.totalorder %s1145_s9, %s249_s12 }
  0x6d   : > { %p1148_p7 = pneg %p1147_p8  ;;  %p1152_p13 = por %p1151_p11, %p1150_p9 }
  0x6f   : > { %p1154_p4 = por %p1153_p1, %p1152_p13 }
  0x71   : > { %p1155_p3 = pnand %p1154_p4, %p1148_p7 }
  0x73   : > { %1158 = shalt.err (!%p1155_p3)  }
  0x74   : > { %s1159_s8 = scalar_lea.vmem %s262_s21, 512  ;;  %p1166_p2 = scmp.lt.s32.totalorder %s262_s21, %s1465_s13 }
  0x75   : > { %p1160_p10 = scmp.ne.s32.totalorder %s262_s21, %s1159_s8  ;;  %s1777_s14 = scalar_lea.vmem %s1465_s13, 1024 }
  0x76   : > { %p1167_p6 = scmp.lt.s32.totalorder %s1777_s14, %s1159_s8 }
  0x77   : > { %p1161_p12 = pnand %p1160_p10, %p1479_p5 }
  0x78   : > { %p1168_p8 = por %p1167_p6, %p1166_p2 }
  0x79   : > { %p1162_p0 = pneg %p1161_p12 }
  0x7b   : > { %p1169_p9 = pnand %p1168_p8, %p1162_p0 }
  0x7d   : > { %1172 = shalt.err (!%p1169_p9)  }
  0x7e   : > { %964 = dma.hbm_to_vmem [thread:$0]  (%p1479_p5), %s249_s12, 512, %s262_s21, %s253_s20 }
  0x7f   : > { %s1504_s9 = scalar_lea.vmem [#allocation8], %s1420_s11 }
  0x80   : > { %1237 = dma.done.wait %s1443_s5, 512 }
  0x81   : > { %1238 = vsyncadd %s1443_s5, 4294966784  ;;  %v1049_v0 = vld [vmem:[#allocation5] sm:$0xff]   ;;  %v1050_v1 = vld [vmem:[#allocation5 + $0x8] sm:$0xff]   ;;  %s878_s5 = sshll.u32 %s1261_s19, 2  ;;  %s879_s13 = sshll.u32 %s1257_s18, 3 }
  0x82   : > { %917 = vmatprep.subr.bf16.mxu0 %v1049_v0  ;;  %941 = vmatprep.subr.bf16.mxu1 %v1049_v0  ;;  %v1051_v2 = vld [vmem:[#allocation5 + $0x10] sm:$0xff]   ;;  %v1052_v3 = vld [vmem:[#allocation5 + $0x18] sm:$0xff]   ;;  %v1509_v4 = vld [vmem:[%s1435_s28] sm:$0xff]  ;;  %s726_s25 = sadd.s32 %s879_s13, %s878_s5  ;;  %s729_s1 = sshll.u32 %s1504_s9, 4  ;;  %s1688_s1 = int_to_ptr.vmem [resolvable:$true] %s729_s1 }
  0x83   : > { %918 = vmatpush3.bf16.msra.mxu0 %v1049_v0  ;;  %949 = vmatpush3.bf16.msra.mxu1 %v1049_v0  ;;  %v1512_v5 = vld [vmem:[%s1435_s28 + $0x10] sm:$0xff]  ;;  %v278_v6 = vunpack.c.l.bf16 %v1509_v4  ;;  %v279_v7 = vunpack.c.h.bf16 %v1509_v4  ;;  %v1053_v12 = vld [vmem:[#allocation5 + $0x20] sm:$0xff]   ;;  %v1541_v19 = vld [vmem:[%s1435_s28 + $0x8] sm:$0xff]  ;;  %s880_s7 = sshll.u32 %s726_s25, 6  ;;  %s1778_s12 = sand.u32 1, %s1249_s16  }
  0x84   : > { %919 = vmatprep.subr.bf16.mxu0 %v1050_v1  ;;  %942 = vmatprep.subr.bf16.mxu1 %v1050_v1  ;;  %v282_v8 = vunpack.c.l.bf16 %v1512_v5  ;;  %v283_v9 = vunpack.c.h.bf16 %v1512_v5  ;;  %v1544_v22 = vld [vmem:[%s1435_s28 + $0x18] sm:$0xff]  ;;  %v1054_v23 = vld [vmem:[#allocation5 + $0x28] sm:$0xff]   ;;  %v280_v28 = vunpack.c.l.bf16 %v1541_v19  ;;  %v281_v29 = vunpack.c.h.bf16 %v1541_v19  ;;  %v1055_v33 = vld [vmem:[#allocation5 + $0x30] sm:$0xff]   ;;  %s1686_s24 = scalar_lea.hbm %s1749_s4, %s880_s7  ;;  %s1693_s26 = scalar_lea.sflag [#allocation7], %s1778_s12 }
  0x85   : > { %v1520_v10 = vmul.f32 0.70710677, %v278_v6  ;;  %v1524_v11 = vmul.f32 0.70710677, %v279_v7  ;;  %v284_v30 = vunpack.c.l.bf16 %v1544_v22  ;;  %v285_v31 = vunpack.c.h.bf16 %v1544_v22  ;;  %v1056_v43 = vld [vmem:[#allocation5 + $0x38] sm:$0xff]   ;;  %s1173_s6 = scalar_lea.vmem %s1688_s1, 256 }
  0x86   : > { %v1528_v13 = vmul.f32 0.70710677, %v282_v8  ;;  %v1532_v14 = vmul.f32 0.70710677, %v283_v9  ;;  %v1553_v35 = vmul.f32 0.70710677, %v280_v28  ;;  %p1174_p5 = scmp.ne.s32.totalorder %s1688_s1, %s1173_s6 }
  0x87   : > { %920 = vmatpush3.bf16.msra.mxu0 %v1050_v1  ;;  %950 = vmatpush3.bf16.msra.mxu1 %v1050_v1  ;;  %v302_v15 = vand.u32 2147483647, %v1520_v10  ;;  %v303_v16 = vand.u32 2147483647, %v1524_v11  ;;  %v1557_v36 = vmul.f32 0.70710677, %v281_v29 }
  0x88   : > { %921 = vmatprep.subr.bf16.mxu0 %v1051_v2  ;;  %943 = vmatprep.subr.bf16.mxu1 %v1051_v2  ;;  %v306_v17 = vand.u32 2147483647, %v1528_v13  ;;  %v1538_v18 = vand.u32 2147483647, %v1532_v14  ;;  %v1561_v38 = vmul.f32 0.70710677, %v284_v30 }
  0x89   : > { %v310_v20 = vmul.f32 0.3275911, %v302_v15  ;;  %v311_v21 = vmul.f32 0.3275911, %v303_v16  ;;  %v414_v37 = vsub.f32 0.0, %v302_v15  ;;  %v415_v40 = vsub.f32 0.0, %v303_v16 }
  0x8a   : > { %v314_v24 = vmul.f32 0.3275911, %v306_v17  ;;  %v315_v25 = vmul.f32 0.3275911, %v1538_v18  ;;  %v1565_v39 = vmul.f32 0.70710677, %v285_v31 }
  0x8b   : > { %922 = vmatpush3.bf16.msra.mxu0 %v1051_v2  ;;  %951 = vmatpush3.bf16.msra.mxu1 %v1051_v2  ;;  %v318_v26 = vadd.f32 1.0, %v310_v20  ;;  %v319_v27 = vadd.f32 1.0, %v311_v21  ;;  %v304_v41 = vand.u32 2147483647, %v1553_v35  ;;  %v305_v42 = vand.u32 2147483647, %v1557_v36 }
  0x8c   : > { %923 = vmatprep.subr.bf16.mxu0 %v1052_v3  ;;  %944 = vmatprep.subr.bf16.mxu1 %v1052_v3  ;;  %v322_v32 = vadd.f32 1.0, %v314_v24  ;;  %v323_v34 = vadd.f32 1.0, %v315_v25  ;;  %v418_v44 = vsub.f32 0.0, %v306_v17  ;;  %v308_v45 = vand.u32 2147483647, %v1561_v38  ;;  %p1779_p7 = scmp.ne.s32.totalorder %s1765_s29, 0 }
  0x8d   : > { %1057 = vrcp.f32 %v318_v26  ;;  %v309_v46 = vand.u32 2147483647, %v1565_v39  ;;  %v419_v47 = vsub.f32 0.0, %v1538_v18  ;;  %v312_v48 = vmul.f32 0.3275911, %v304_v41  ;;  %s1279_s27 = smov [#allocation8]  }
  0x8e   : > { %1059 = vrcp.f32 %v319_v27  ;;  %v313_v49 = vmul.f32 0.3275911, %v305_v42  ;;  %v1574_v50 = vmul.f32 0.5, %v278_v6  ;;  %v316_v51 = vmul.f32 0.3275911, %v308_v45  ;;  %p1175_p11 = pnand %p1174_p5, %p1779_p7  ;;  %s1177_s10 = sshll.u32 %s1279_s27, 4  ;;  %s1178_s10 = int_to_ptr.vmem [resolvable:$false] %s1177_s10 }
  0x8f   : > { %924 = vmatpush3.bf16.msra.mxu0 %v1052_v3  ;;  %952 = vmatpush3.bf16.msra.mxu1 %v1052_v3  ;;  %1061 = vrcp.f32 %v322_v32  ;;  %v317_v52 = vmul.f32 0.3275911, %v309_v46  ;;  %v1578_v53 = vmul.f32 0.5, %v279_v7  ;;  %v422_v54 = vmul.f32 %v414_v37, %v302_v15  ;;  %v872_v22 = vld [vmem:[%s1748_s3] ss:$0 sm:$0xff]  ;;  %s1179_s23 = scalar_lea.vmem %s1178_s10, 512  ;;  %p1180_p1 = scmp.lt.s32.totalorder %s1688_s1, %s1178_s10 }
  0x90   : > { %925 = vmatprep.subr.bf16.mxu0 %v1053_v12  ;;  %945 = vmatprep.subr.bf16.mxu1 %v1053_v12  ;;  %1063 = vrcp.f32 %v323_v34  ;;  %v320_v55 = vadd.f32 1.0, %v312_v48  ;;  %v321_v56 = vadd.f32 1.0, %v313_v49  ;;  %v423_v57 = vmul.f32 %v415_v40, %v303_v16  ;;  %p1176_p13 = pneg %p1175_p11  ;;  %p1181_p4 = scmp.lt.s32.totalorder %s1179_s23, %s1173_s6 }
  0x91   : > { %v1582_v58 = vmul.f32 0.5, %v282_v8  ;;  %v426_v59 = vmul.f32 %v418_v44, %v306_v17  ;;  %v416_v60 = vsub.f32 0.0, %v304_v41  ;;  %v427_v62 = vmul.f32 %v419_v47, %v1538_v18 }
  0x92   : > { %1065 = vrcp.f32 %v320_v55  ;;  %v417_v63 = vsub.f32 0.0, %v305_v42  ;;  %v324_v0 = vadd.f32 1.0, %v316_v51  ;;  %v325_v3 = vadd.f32 1.0, %v317_v52  ;;  %p1182_p3 = por %p1181_p4, %p1180_p1 }
  0x93   : > { %926 = vmatpush3.bf16.msra.mxu0 %v1053_v12  ;;  %953 = vmatpush3.bf16.msra.mxu1 %v1053_v12  ;;  %1067 = vrcp.f32 %v321_v56  ;;  %v420_v4 = vsub.f32 0.0, %v308_v45  ;;  %v430_v7 = vmul.f32 1.442695, %v422_v54  ;;  %v1593_v8 = vmul.f32 0.5, %v283_v9 }
  0x94   : > { %927 = vmatprep.subr.bf16.mxu0 %v1054_v23  ;;  %946 = vmatprep.subr.bf16.mxu1 %v1054_v23  ;;  %v421_v12 = vsub.f32 0.0, %v309_v46  ;;  %v432_v16 = vmul.f32 1.442695, %v423_v57  ;;  %v438_v17 = vmul.f32 1.442695, %v426_v59  ;;  %v424_v18 = vmul.f32 %v416_v60, %v304_v41  ;;  %p1183_p10 = pnand %p1182_p3, %p1176_p13 }
  0x95   : > { %v425_v24 = vmul.f32 %v417_v63, %v305_v42  ;;  %1069 = vrcp.f32 %v324_v0  ;;  %v428_v5 = vmul.f32 %v420_v4, %v308_v45  ;;  %vm462_vm0 = vcmp.ge.f32.partialorder %v1520_v10, 0.0 }
  0x96   : > { %1071 = vrcp.f32 %v325_v3  ;;  %v434_v40 = vmul.f32 1.442695, %v424_v18  ;;  %vm463_vm1 = vcmp.ge.f32.partialorder %v1524_v11, 0.0  ;;  %vm466_vm2 = vcmp.ge.f32.partialorder %v1528_v13, 0.0 }
  0x97   : > { %928 = vmatpush3.bf16.msra.mxu0 %v1054_v23  ;;  %954 = vmatpush3.bf16.msra.mxu1 %v1054_v23  ;;  %v1584_v61 = vpop.eup %1057  ;;  %v440_v23 = vmul.f32 1.442695, %v427_v62  ;;  %1073 = vpow2.f32 %v430_v7  ;;  %v442_v48 = vmul.f32 1.442695, %v428_v5  ;;  %vm467_vm3 = vcmp.ge.f32.partialorder %v1532_v14, 0.0 }
  0x98   : > { %929 = vmatprep.subr.bf16.mxu0 %v1055_v33  ;;  %947 = vmatprep.subr.bf16.mxu1 %v1055_v33  ;;  %v1587_v1 = vpop.eup %1059  ;;  %v342_v2 = vmul.f32 1.0614054, %v1584_v61  ;;  %1075 = vpow2.f32 %v432_v16  ;;  %vm464_vm4 = vcmp.ge.f32.partialorder %v1553_v35, 0.0  ;;  %vm465_vm5 = vcmp.ge.f32.partialorder %v1557_v36, 0.0 }
  0x99   : > { %v343_v6 = vmul.f32 1.0614054, %v1587_v1  ;;  %v1595_v20 = vpop.eup %1061  ;;  %1077 = vpow2.f32 %v438_v17  ;;  %vm468_vm6 = vcmp.ge.f32.partialorder %v1561_v38, 0.0  ;;  %vm469_vm7 = vcmp.ge.f32.partialorder %v1565_v39, 0.0  ;;  %v871_v39 = vld [vmem:[%s1747_s2] ss:$0 sm:$0xff] }
  0x9a   : > { %v350_v15 = vadd.f32 -1.4531521, %v342_v2  ;;  %v1597_v25 = vpop.eup %1063  ;;  %v346_v27 = vmul.f32 1.0614054, %v1595_v20  ;;  %1079 = vpow2.f32 %v440_v23 }
  0x9b   : > { %930 = vmatpush3.bf16.msra.mxu0 %v1055_v33  ;;  %955 = vmatpush3.bf16.msra.mxu1 %v1055_v33  ;;  %v351_v21 = vadd.f32 -1.4531521, %v343_v6  ;;  %v347_v32 = vmul.f32 1.0614054, %v1597_v25  ;;  %v429_v33 = vmul.f32 %v421_v12, %v309_v46  ;;  %1081 = vpow2.f32 %v434_v40 }
  0x9c   : > { %931 = vmatprep.subr.bf16.mxu0 %v1056_v43  ;;  %948 = vmatprep.subr.bf16.mxu1 %v1056_v43  ;;  %v358_v26 = vmul.f32 %v1584_v61, %v350_v15  ;;  %v354_v37 = vadd.f32 -1.4531521, %v346_v27  ;;  %v1605_v45 = vpop.eup %1065 }
  0x9d   : > { %v359_v9 = vmul.f32 %v1587_v1, %v351_v21  ;;  %v355_v42 = vadd.f32 -1.4531521, %v347_v32  ;;  %v444_v46 = vmul.f32 1.442695, %v429_v33  ;;  %v1609_v52 = vpop.eup %1067  ;;  %v344_v56 = vmul.f32 1.0614054, %v1605_v45 }
  0x9e   : > { %v366_v34 = vadd.f32 1.4214138, %v358_v26  ;;  %v362_v47 = vmul.f32 %v1595_v20, %v354_v37  ;;  %v345_v60 = vmul.f32 1.0614054, %v1609_v52 }
  0x9f   : > { %932 = vmatpush3.bf16.msra.mxu0 %v1056_v43  ;;  %956 = vmatpush3.bf16.msra.mxu1 %v1056_v43  ;;  %v367_v41 = vadd.f32 1.4214138, %v359_v9  ;;  %v436_v43 = vmul.f32 1.442695, %v425_v24  ;;  %v363_v51 = vmul.f32 %v1597_v25, %v355_v42  ;;  %v352_v0 = vadd.f32 -1.4531521, %v344_v56  ;;  %v1615_v2 = vpop.eup %1069 }
  0xa0   : > { %v374_v44 = vmul.f32 %v1584_v61, %v366_v34  ;;  %v370_v55 = vadd.f32 1.4214138, %v362_v47  ;;  %v353_v6 = vadd.f32 -1.4531521, %v345_v60  ;;  %v1620_v7 = vpop.eup %1071  ;;  %v348_v17 = vmul.f32 1.0614054, %v1615_v2 }
  0xa1   : > { %v375_v49 = vmul.f32 %v1587_v1, %v367_v41  ;;  %v371_v59 = vadd.f32 1.4214138, %v363_v51  ;;  %1083 = vpow2.f32 %v436_v43  ;;  %v360_v16 = vmul.f32 %v1605_v45, %v352_v0  ;;  %v1074_v18 = vpop.eup %1073 }
  0xa2   : > { %v382_v54 = vadd.f32 -0.28449672, %v374_v44  ;;  %v378_v63 = vmul.f32 %v1595_v20, %v370_v55  ;;  %1085 = vpow2.f32 %v442_v48  ;;  %v361_v24 = vmul.f32 %v1609_v52, %v353_v6  ;;  %v1076_v27 = vpop.eup %1075 }
  0xa3   : > { %v383_v57 = vadd.f32 -0.28449672, %v375_v49  ;;  %v379_v4 = vmul.f32 %v1597_v25, %v371_v59  ;;  %1087 = vpow2.f32 %v444_v46  ;;  %v349_v26 = vmul.f32 1.0614054, %v1620_v7  ;;  %v1078_v42 = vpop.eup %1077 }
  0xa4   : > { %v390_v62 = vmul.f32 %v1584_v61, %v382_v54  ;;  %v386_v15 = vadd.f32 -0.28449672, %v378_v63  ;;  %v368_v32 = vadd.f32 1.4214138, %v360_v16  ;;  %v356_v33 = vadd.f32 -1.4531521, %v348_v17  ;;  %v1080_v48 = vpop.eup %1079 }
  0xa5   : > { %v391_v3 = vmul.f32 %v1587_v1, %v383_v57  ;;  %v387_v23 = vadd.f32 -0.28449672, %v379_v4  ;;  %v369_v40 = vadd.f32 1.4214138, %v361_v24  ;;  %v357_v41 = vadd.f32 -1.4531521, %v349_v26  ;;  %v1082_v54 = vpop.eup %1081 }
  0xa6   : > { %v398_v12 = vadd.f32 0.2548296, %v390_v62  ;;  %v394_v9 = vmul.f32 %v1595_v20, %v386_v15  ;;  %v376_v47 = vmul.f32 %v1605_v45, %v368_v32 }
  0xa7   : > { %v399_v21 = vadd.f32 0.2548296, %v391_v3  ;;  %v395_v37 = vmul.f32 %v1597_v25, %v387_v23  ;;  %v365_v46 = vmul.f32 %v1620_v7, %v357_v41 }
  0xa8   : > { %v406_v5 = vmul.f32 %v1584_v61, %v398_v12  ;;  %v402_v44 = vadd.f32 0.2548296, %v394_v9  ;;  %v364_v61 = vmul.f32 %v1615_v2, %v356_v33  ;;  %v384_v57 = vadd.f32 -0.28449672, %v376_v47 }
  0xa9   : > { %v407_v34 = vmul.f32 %v1587_v1, %v399_v21  ;;  %v403_v51 = vadd.f32 0.2548296, %v395_v37  ;;  %v377_v1 = vmul.f32 %v1609_v52, %v369_v40  ;;  %v373_v3 = vadd.f32 1.4214138, %v365_v46 }
  0xaa   : > { %v446_v43 = vmul.f32 %v1074_v18, %v406_v5  ;;  %v410_v56 = vmul.f32 %v1595_v20, %v402_v44  ;;  %v372_v59 = vadd.f32 1.4214138, %v364_v61  ;;  %v392_v15 = vmul.f32 %v1605_v45, %v384_v57 }
  0xab   : > { %v447_v49 = vmul.f32 %v1076_v27, %v407_v34  ;;  %v1084_v60 = vpop.eup %1083  ;;  %v411_v63 = vmul.f32 %v1597_v25, %v403_v51  ;;  %v385_v0 = vadd.f32 -0.28449672, %v377_v1  ;;  %v381_v23 = vmul.f32 %v1620_v7, %v373_v3 }
  0xac   : > { %v454_v55 = vsub.f32 1.0, %v446_v43  ;;  %v1086_v4 = vpop.eup %1085  ;;  %v450_v12 = vmul.f32 %v1078_v42, %v410_v56  ;;  %v380_v16 = vmul.f32 %v1615_v2, %v372_v59  ;;  %v400_v26 = vadd.f32 0.2548296, %v392_v15 }
  0xad   : > { %v455_v62 = vsub.f32 1.0, %v447_v49  ;;  %v1088_v17 = vpop.eup %1087  ;;  %v451_v21 = vmul.f32 %v1080_v48, %v411_v63  ;;  %v393_v20 = vmul.f32 %v1609_v52, %v385_v0  ;;  %v389_v41 = vadd.f32 -0.28449672, %v381_v23 }
  0xae   : > { %v470_v6 = vsub.f32 0.0, %v454_v55  ;;  %v458_v25 = vsub.f32 1.0, %v450_v12  ;;  %v388_v27 = vadd.f32 -0.28449672, %v380_v16  ;;  %v408_v40 = vmul.f32 %v1605_v45, %v400_v26 }
  0xaf   : > { %v471_v18 = vsub.f32 0.0, %v455_v62  ;;  %v459_v32 = vsub.f32 1.0, %v451_v21  ;;  %v401_v33 = vadd.f32 0.2548296, %v393_v20  ;;  %v397_v48 = vmul.f32 %v1620_v7, %v389_v41 }
  0xb0   : > { %v478_v24 = vsel %vm462_vm0, %v454_v55, %v470_v6  ;;  %v474_v37 = vsub.f32 0.0, %v458_v25  ;;  %v396_v44 = vmul.f32 %v1615_v2, %v388_v27  ;;  %v448_v61 = vmul.f32 %v1082_v54, %v408_v40 }
  0xb1   : > { %v479_v5 = vsel %vm463_vm1, %v455_v62, %v471_v18  ;;  %v486_v9 = vadd.f32 1.0, %v478_v24  ;;  %v475_v43 = vsub.f32 0.0, %v459_v32  ;;  %v409_v10 = vmul.f32 %v1609_v52, %v401_v33 }
  0xb2   : > { %v487_v34 = vadd.f32 1.0, %v479_v5  ;;  %v482_v11 = vsel %vm466_vm2, %v458_v25, %v474_v37  ;;  %v404_v1 = vadd.f32 0.2548296, %v396_v44  ;;  %v456_v55 = vsub.f32 1.0, %v448_v61 }
  0xb3   : > { %v494_v42 = vmul.f32 %v486_v9, %v1574_v50  ;;  %v483_v49 = vsel %vm467_vm3, %v459_v32, %v475_v43  ;;  %v490_v45 = vadd.f32 1.0, %v482_v11  ;;  %v449_v51 = vmul.f32 %v1084_v60, %v409_v10 }
  0xb4   : > { %v495_v47 = vmul.f32 %v487_v34, %v1578_v53  ;;  %v491_v46 = vadd.f32 1.0, %v483_v49  ;;  %v405_v52 = vadd.f32 0.2548296, %v397_v48  ;;  %v412_v13 = vmul.f32 %v1615_v2, %v404_v1 }
  0xb5   : > { %v498_v56 = vmul.f32 %v490_v45, %v1582_v58  ;;  %v457_v57 = vsub.f32 1.0, %v449_v51  ;;  %v472_v14 = vsub.f32 0.0, %v456_v55  ;;  %v288_v59 = vmul.f32 0.5, %v280_v28 }
  0xb6   : > { %v502_v50 = vpack.c.bf16 %v495_v47, %v494_v42  ;;  %v499_v53 = vmul.f32 %v491_v46, %v1593_v8  ;;  %v413_v54 = vmul.f32 %v1620_v7, %v405_v52  ;;  %v452_v62 = vmul.f32 %v1086_v4, %v412_v13 }
  0xb7   : > { %v473_v60 = vsub.f32 0.0, %v457_v57  ;;  %v289_v58 = vmul.f32 0.5, %v281_v29  ;;  %v480_v35 = vsel %vm464_vm4, %v456_v55, %v472_v14  ;;  %v292_v4 = vmul.f32 0.5, %v284_v30 }
  0xb8   : > { %933 = vmatprep.mubr.bf16.mxu0 %v502_v50  ;;  %v504_v63 = vpack.c.bf16 %v499_v53, %v498_v56  ;;  %v453_v0 = vmul.f32 %v1088_v17, %v413_v54  ;;  %v488_v3 = vadd.f32 1.0, %v480_v35  ;;  %v460_v6 = vsub.f32 1.0, %v452_v62 }
  0xb9   : > { %v481_v2 = vsel %vm465_vm5, %v457_v57, %v473_v60  ;;  %v293_v29 = vmul.f32 0.5, %v285_v31 }
  0xba   : > { %937 = vmatprep.mubr.bf16.mxu1 %v504_v63  ;;  %v489_v8 = vadd.f32 1.0, %v481_v2  ;;  %v461_v36 = vsub.f32 1.0, %v453_v0  ;;  %v496_v7 = vmul.f32 %v488_v3, %v288_v59  ;;  %v476_v28 = vsub.f32 0.0, %v460_v6 }
  0xbc   : > { %v497_v12 = vmul.f32 %v489_v8, %v289_v58  ;;  %v477_v19 = vsub.f32 0.0, %v461_v36  ;;  %v484_v15 = vsel %vm468_vm6, %v460_v6, %v476_v28 }
  0xbd   : > { %v492_v18 = vadd.f32 1.0, %v484_v15 }
  0xbe   : > { %v503_v16 = vpack.c.bf16 %v497_v12, %v496_v7  ;;  %v485_v17 = vsel %vm469_vm7, %v461_v36, %v477_v19 }
  0xbf   : > { %v493_v21 = vadd.f32 1.0, %v485_v17  ;;  %v500_v20 = vmul.f32 %v492_v18, %v292_v4 }
  0xc0   : > { %934 = vmatmul.mubr.bf16.vlgmr.msra.gmra.mrb[0].mxu0 %v503_v16 }
  0xc1   : > { %v501_v38 = vmul.f32 %v493_v21, %v293_v29 }
  0xc3   : > { %v505_v23 = vpack.c.bf16 %v501_v38, %v500_v20 }
  0xc5   : > { %938 = vmatmul.mubr.bf16.vlgmr.msra.gmra.mrb[0].mxu1 %v505_v23 }
 0x193   : > { %v935_v24 = vpop.f32.mrb[0].mxu0 }
 0x194   : > { %v644_v30 = vmul.f32 %v935_v24, %v871_v39  ;;  %v604_v31 = vpop.f32.mrb[1].mxu0 }
 0x195   : > { %v642_v25 = vmul.f32 %v871_v39, %v604_v31  ;;  %v936_v26 = vpop.f32.mrb[2].mxu0 }
 0x196   : > { %v659_v27 = vadd.f32 %v872_v22, %v644_v30  ;;  %v645_v5 = vmul.f32 %v936_v26, %v871_v39  ;;  %v607_v9 = vpop.f32.mrb[3].mxu0 }
 0x197   : > { %v657_v32 = vadd.f32 %v872_v22, %v642_v25  ;;  %v643_v33 = vmul.f32 %v871_v39, %v607_v9 }
 0x198   : > { %667 = vst [vmem:[#allocation4 + $0x10] sm:$0xff] %v659_v27  ;;  %v939_v34 = vpop.f32.mrb[0].mxu1  ;;  %v660_v37 = vadd.f32 %v872_v22, %v645_v5 }
 0x199   : > { %v648_v40 = vmul.f32 %v939_v34, %v871_v39  ;;  %665 = vst [vmem:[#allocation4] sm:$0xff] %v657_v32  ;;  %v620_v41 = vpop.f32.mrb[1].mxu1  ;;  %v658_v42 = vadd.f32 %v872_v22, %v643_v33 }
 0x19a   : > { %v646_v43 = vmul.f32 %v871_v39, %v620_v41  ;;  %668 = vst [vmem:[#allocation4 + $0x18] sm:$0xff] %v660_v37  ;;  %v940_v10 = vpop.f32.mrb[2].mxu1 }
 0x19b   : > { %v663_v44 = vadd.f32 %v872_v22, %v648_v40  ;;  %v649_v47 = vmul.f32 %v940_v10, %v871_v39  ;;  %666 = vst [vmem:[#allocation4 + $0x8] sm:$0xff] %v658_v42  ;;  %v623_v11 = vpop.f32.mrb[3].mxu1 }
 0x19c   : > { %v661_v61 = vadd.f32 %v872_v22, %v646_v43  ;;  %v647_v48 = vmul.f32 %v871_v39, %v623_v11 }
 0x19d   : > { %671 = vst [vmem:[#allocation4 + $0x30] sm:$0xff] %v663_v44  ;;  %v664_v49 = vadd.f32 %v872_v22, %v649_v47 }
 0x19e   : > { %669 = vst [vmem:[#allocation4 + $0x20] sm:$0xff] %v661_v61  ;;  %v662_v45 = vadd.f32 %v872_v22, %v647_v48 }
 0x19f   : > { %672 = vst [vmem:[#allocation4 + $0x38] sm:$0xff] %v664_v49 }
 0x1a0   : > { %670 = vst [vmem:[#allocation4 + $0x28] sm:$0xff] %v662_v45 }
 0x1a1   : > { %v675_v51 = vld [vmem:[#allocation4 + $0x10] ss:$2 sm:$0xff]  ;;  %v683_v1 = vld [vmem:[#allocation4 + $0x11] ss:$2 sm:$0xff] }
 0x1a2   : > { %v673_v50 = vld [vmem:[#allocation4] ss:$2 sm:$0xff]  ;;  %v681_v46 = vld [vmem:[#allocation4 + $0x1] ss:$2 sm:$0xff]  ;;  %v689_v55 = vmax.f32 %v675_v51, %v683_v1 }
 0x1a3   : > { %v688_v52 = vmax.f32 %v673_v50, %v681_v46 }
 0x1a5   : > { %v897_v56 = vpack.c.bf16 %v689_v55, %v688_v52 }
 0x1a6   : > { %v679_v57 = vld [vmem:[#allocation4 + $0x30] ss:$2 sm:$0xff]  ;;  %v687_v13 = vld [vmem:[#allocation4 + $0x31] ss:$2 sm:$0xff] }
 0x1a7   : > { %v677_v53 = vld [vmem:[#allocation4 + $0x20] ss:$2 sm:$0xff]  ;;  %v685_v14 = vld [vmem:[#allocation4 + $0x21] ss:$2 sm:$0xff]  ;;  %v691_v54 = vmax.f32 %v679_v57, %v687_v13  ;;  %898 = vst [vmem:[%s1504_s9] sm:$0xff] %v897_v56  }
 0x1a8   : > { %v690_v59 = vmax.f32 %v677_v53, %v685_v14 }
 0x1aa   : > { %v902_v60 = vpack.c.bf16 %v691_v54, %v690_v59 }
 0x1ac   : > { %904 = vst [vmem:[%s1504_s9 + $0x8] sm:$0xff] %v902_v60  }
 0x1ad   : > { %1186 = shalt.err (!%p1183_p10)
}
 0x1ae   : > { %s1187_s8 = scalar_lea.hbm %s1686_s24, 256  ;;  %s1191_s20 = scalar_lea.hbm %s1749_s4, 1024 }
 0x1af   : > { %p1188_p12 = scmp.ne.s32.totalorder %s1686_s24, %s1187_s8  ;;  %p1192_p6 = scmp.lt.u32.totalorder %s1686_s24, %s1749_s4 }
 0x1b0   : > { %p1193_p8 = scmp.lt.u32.totalorder %s1191_s20, %s1187_s8  ;;  %p1195_p5 = scmp.lt.u32.totalorder %s1187_s8, %s1686_s24 }
 0x1b1   : > { %p1189_p0 = pnand %p1188_p12, %p1779_p7 }
 0x1b2   : > { %p1194_p9 = por %p1193_p8, %p1192_p6 }
 0x1b3   : > { %p1190_p2 = pneg %p1189_p0 }
 0x1b4   : > { %p1196_p11 = por %p1195_p5, %p1194_p9 }
 0x1b6   : > { %p1197_p13 = pnand %p1196_p11, %p1190_p2 }
 0x1b8   : > { %1200 = shalt.err (!%p1197_p13)
}
 0x1b9   : > { %s1280_s28 = smov 64   ;;  %s1281_s5 = smov 4  }
 0x1ba   : > { %965 = dma.vmem_to_hbm [thread:$0]  (%p1779_p7), %s1688_s1, 256, %s1686_s24, %s1693_s26, %s1280_s28, %s1280_s28, %s1281_s5  }
 0x1bb PF: > { %p979_p1 = scmp.ge.s32.totalorder %s1273_s22, 2  ;;  %s744_s13 = sand.u32 1, %s1245_s15  }
 0x1bc   : > { %p1780_p4 = scmp.ne.s32.totalorder %s1767_s30, 0  ;;  %s745_s25 = scalar_lea.sflag [#allocation7], %s744_s13 }
 0x1be   : > { %p972_p3 = pnand %p979_p1, %p1780_p4 }
 0x1c0   : > { %1240 = dma.done.wait (!%p972_p3), %s745_s25, 256  }
 0x1c1   : > { %1242 = vsyncadd (!%p972_p3), %s745_s25, 4294967040  ;;  %s18_s22 = sadd.s32 1, %s1273_s22   ;;  %s1781_s7 = sld [smem:[#allocation22_spill]] }
 0x1c2   : > { %p15_p10 = scmp.ge.s32.totalorder %s18_s22, 6   ;;  %s1782_s18 = sld [smem:[#allocation18_spill]] }
 0x1c3   : > { %s1783_s19 = sld [smem:[#allocation19_spill]]  ;;  %s1784_s20 = sld [smem:[#allocation20_spill]] }
 0x1c4   : > { %s1785_s21 = sld [smem:[#allocation21_spill]]  ;;  %s1786_s15 = smov %s1249_s16 }
 0x1c5   : > { %s1787_s16 = smov %s1253_s17  ;;  %17 = sbr.rel (!%p15_p10) target bundleno = 8 (0x8), region = 101 }
 0x1c7   : > { %s1788_s17 = smov %s1781_s7 }
 0x1cc   :  { %750 = vsyncpa [#allocation6], 1 }
 0x1cd   :  { %752 = vsyncpa [#allocation6 + $0x1], 1 }
 0x1ce   :  { %753 = vsyncpa [#allocation7], 1 }
 0x1cf   :  { %755 = vsyncpa [#allocation7 + $0x1], 1 }
 0x1d0   :  { %756 = vsyncmov [#allocation3] }
 0x1d3   :  { %s757_s29 = vpop.sfrf %756 }
 0x1d4   :  { %p883_p7 = scmp.ne.s32.totalorder %s757_s29, 0 }
 0x1d6   :  { %761 = shalt.err (%p883_p7)  }
 0x1d7   :  { %763 = vsyncmov [#allocation3 + $0x1] }
 0x1da   :  { %s764_s30 = vpop.sfrf %763 }
 0x1db   :  { %p884_p12 = scmp.ne.s32.totalorder %s764_s30, 0 }
 0x1dd   :  { %768 = shalt.err (%p884_p12)  }

</bundles_post_ra>
